<compile_context>
chip_gen: v7x
topology: tpu7x:2x2x1
jax: 0.10.0
libtpu: 0.0.40
codegen_flags: <defaults>
</compile_context>

<pallas_src>
import jax
import jax.numpy as jnp
from jax import lax
from jax.experimental import pallas as pl
from jax.experimental.pallas import tpu as pltpu

NEG_SLOPE = 0.01  # PyTorch nn.LeakyReLU default

# Packed parameter layout (49 f32 scalars, scalar-prefetched into SMEM):
#   w1 (8,4)  -> [ 0:32]   w1[k, j] at  0 + k*4 + j
#   b1 (4,)   -> [32:36]
#   w2 (4,2)  -> [36:44]   w2[k, j] at 36 + k*2 + j
#   b2 (2,)   -> [44:46]
#   w3 (2,1)  -> [46:48]   w3[k, 0] at 46 + k
#   b3 (1,)   -> [48]
_N_PARAMS = 49

# Tiling knobs (in lanes; each lane column carries 8 batch rows on sublanes).
_CHUNK_L = 512      # inner chunk: one (8,512) f32 slab = 4 vregs, ~24 live vregs
_MAX_TILE_L = 8192  # per-grid-step lanes: 2 MiB input tile >> 0.35 us step cost


def _round_up(v, m):
    return (v + m - 1) // m * m


def _leaky(v):
    return jnp.where(v >= 0, v, NEG_SLOPE * v)


def _make_kernel(tile_l, chunk_l):
    n_chunks = tile_l // chunk_l

    def kernel(p_ref, x_ref, o_ref):
        # p_ref: (49,) f32 SMEM (scalar prefetch)
        # x_ref: (8 features, 8 sublanes, tile_l lanes) f32 VMEM
        # o_ref: (8 sublanes, tile_l lanes) f32 VMEM
        pv = [p_ref[i] for i in range(_N_PARAMS)]  # hoist SMEM scalar reads

        def chunk_body(c, carry):
            off = pl.multiple_of(c * chunk_l, 128)

            # Layer 1: 8 -> 4. Stream one feature slab at a time so only
            # ~5 (8, chunk) slabs are live at once.
            xk = x_ref[0, :, pl.ds(off, chunk_l)]            # (8, chunk)
            acc1 = [xk * pv[j] for j in range(4)]
            for k in range(1, 8):
                xk = x_ref[k, :, pl.ds(off, chunk_l)]
                for j in range(4):
                    acc1[j] = acc1[j] + xk * pv[k * 4 + j]
            h1 = [_leaky(acc1[j] + pv[32 + j]) for j in range(4)]

            # Layer 2: 4 -> 2.
            acc2 = [h1[0] * pv[36 + j] for j in range(2)]
            for k in range(1, 4):
                for j in range(2):
                    acc2[j] = acc2[j] + h1[k] * pv[36 + k * 2 + j]
            h2 = [_leaky(acc2[j] + pv[44 + j]) for j in range(2)]

            # Layer 3: 2 -> 1; sigmoid = 1/(1+exp(-z)) via EUP exp + rcp.
            z = h2[0] * pv[46] + h2[1] * pv[47] + pv[48]
            out = pl.reciprocal(1.0 + jnp.exp(-z), approx=True)
            o_ref[:, pl.ds(off, chunk_l)] = out.astype(o_ref.dtype)
            return carry

        lax.fori_loop(0, n_chunks, chunk_body, 0, unroll=True)

    return kernel


def model_2_forward(x, params):
    """x: (B, 8). Returns (B, 1) float32."""
    w1, b1, w2, b2, w3, b3 = params
    B = x.shape[0]

    packed = jnp.concatenate([
        w1.reshape(-1), b1.reshape(-1),
        w2.reshape(-1), b2.reshape(-1),
        w3.reshape(-1), b3.reshape(-1),
    ]).astype(jnp.float32)                                   # (49,)

    # ---- tiling choice ---------------------------------------------------
    l_need = _round_up(-(-B // 8), 128)          # lanes needed, 128-aligned
    if l_need <= _CHUNK_L:
        tile_l = l_need                          # one small tile, one chunk
    else:
        # >= 2 grid steps when there is enough work (v7x has 2 TensorCores),
        # capped so one input tile stays ~2 MiB (trivially inside VMEM).
        half = _round_up(_round_up(l_need, _CHUNK_L) // 2, _CHUNK_L)
        tile_l = max(_CHUNK_L, min(_MAX_TILE_L, half))
    chunk_l = min(_CHUNK_L, tile_l)
    n_tiles = -(-l_need // tile_l)
    l_pad = n_tiles * tile_l
    b_pad = 8 * l_pad

    # ---- layout: batch onto (8 sublanes, l_pad lanes), features leading ---
    # TODO(synk): this transpose/pad is an extra HBM round trip; when
    # integrating, have the producer emit x already in (8, 8, L) layout.
    x_p = jnp.pad(x.astype(jnp.float32), ((0, b_pad - B), (0, 0)))  # (b_pad, 8)
    x_t = x_p.T.reshape(8, 8, l_pad)             # [f, s, l] = x_p[s*l_pad + l, f]

    cost = pl.CostEstimate(
        flops=2 * b_pad * (8 * 4 + 4 * 2 + 2 * 1),
        transcendentals=2 * b_pad,                            # exp + rcp
        bytes_accessed=b_pad * 8 * 4 + b_pad * 4 + _N_PARAMS * 4,
    )

    out_t = pl.pallas_call(
        _make_kernel(tile_l, chunk_l),
        out_shape=jax.ShapeDtypeStruct((8, l_pad), jnp.float32),
        grid_spec=pltpu.PrefetchScalarGridSpec(
            num_scalar_prefetch=1,                            # params -> SMEM once
            grid=(n_tiles,),
            in_specs=[pl.BlockSpec((8, 8, tile_l), lambda i, p: (0, 0, i))],
            out_specs=pl.BlockSpec((8, tile_l), lambda i, p: (0, i)),
        ),
        compiler_params=pltpu.CompilerParams(
            dimension_semantics=("parallel",),                # shard tiles on v7x
        ),
        cost_estimate=cost,
    )(packed, x_t)

    # out_t[s, l] is batch row s*l_pad + l.
    return out_t.reshape(-1)[:B].reshape(B, 1)


def init_params(key):
    """Deterministic init matching the PyTorch layer shapes.
    Weights stored as (in, out); biases as (out,)."""
    ks = jax.random.split(key, 6)

    def linear(kw, kb, fan_in, fan_out):
        bound = 1.0 / jnp.sqrt(fan_in)
        w = jax.random.uniform(kw, (fan_in, fan_out), jnp.float32, -bound, bound)
        b = jax.random.uniform(kb, (fan_out,), jnp.float32, -bound, bound)
        return w, b

    w1, b1 = linear(ks[0], ks[1], 8, 4)
    w2, b2 = linear(ks[2], ks[3], 4, 2)
    w3, b3 = linear(ks[4], ks[5], 2, 1)
    return (w1, b1, w2, b2, w3, b3)


def reference_forward(x, params):
    w1, b1, w2, b2, w3, b3 = params
    h = x @ w1 + b1
    h = jnp.where(h >= 0, h, NEG_SLOPE * h)
    h = h @ w2 + b2
    h = jnp.where(h >= 0, h, NEG_SLOPE * h)
    return jax.nn.sigmoid(h @ w3 + b3)


if __name__ == "__main__":
    key = jax.random.PRNGKey(0)
    k_x, k_x2, k_p = jax.random.split(key, 3)
    params = init_params(k_p)

    # Small batch: single tile, single chunk.
    B = 8
    x = jax.random.normal(k_x, (B, 8), dtype=jnp.float32)
    out = jax.block_until_ready(model_2_forward(x, params))
    ref = reference_forward(x, params)
    assert out.shape == (B, 1)
    # 2e-3 tolerance: approx EUP reciprocal in the sigmoid trades ~1e-4 accuracy.
    assert jnp.allclose(out, ref, atol=2e-3, rtol=2e-3), \
        float(jnp.max(jnp.abs(out - ref)))

    # Larger (still small) batch exercising the multi-tile / multi-chunk path
    # and the non-multiple-of-tile padding.
    B2 = 12000
    x2 = jax.random.normal(k_x2, (B2, 8), dtype=jnp.float32)
    out2 = jax.block_until_ready(model_2_forward(x2, params))
    ref2 = reference_forward(x2, params)
    assert out2.shape == (B2, 1)
    assert jnp.allclose(out2, ref2, atol=2e-3, rtol=2e-3), \
        float(jnp.max(jnp.abs(out2 - ref2)))

    print("KERNEL_OK")
</pallas_src>

<mosaic_0001>
module attributes {stable_mosaic.version = 11 : i64} {
  func.func @kernel(%arg0: i32, %arg1: memref<49xf32, #tpu.memory_space<smem>>, %arg2: memref<8x8x128xf32, #tpu.memory_space<vmem>>, %arg3: memref<8x128xf32, #tpu.memory_space<vmem>>) attributes {dimension_semantics = [#tpu.dimension_semantics<parallel>], iteration_bounds = array<i64: 1>, scalar_prefetch = 1 : i64, scratch_operands = 0 : i64, tpu.core_type = #tpu.core_type<tc>, window_params = [{transform_indices = @transform_0, window_bounds = array<i64: 8, 8, 128>}, {transform_indices = @transform_1, window_bounds = array<i64: 8, 128>}]} {
    %c0 = arith.constant 0 : index
    %0 = memref.load %arg1[%c0] : memref<49xf32, #tpu.memory_space<smem>>
    %c1 = arith.constant 1 : index
    %1 = memref.load %arg1[%c1] : memref<49xf32, #tpu.memory_space<smem>>
    %c2 = arith.constant 2 : index
    %2 = memref.load %arg1[%c2] : memref<49xf32, #tpu.memory_space<smem>>
    %c3 = arith.constant 3 : index
    %3 = memref.load %arg1[%c3] : memref<49xf32, #tpu.memory_space<smem>>
    %c4 = arith.constant 4 : index
    %4 = memref.load %arg1[%c4] : memref<49xf32, #tpu.memory_space<smem>>
    %c5 = arith.constant 5 : index
    %5 = memref.load %arg1[%c5] : memref<49xf32, #tpu.memory_space<smem>>
    %c6 = arith.constant 6 : index
    %6 = memref.load %arg1[%c6] : memref<49xf32, #tpu.memory_space<smem>>
    %c7 = arith.constant 7 : index
    %7 = memref.load %arg1[%c7] : memref<49xf32, #tpu.memory_space<smem>>
    %c8 = arith.constant 8 : index
    %8 = memref.load %arg1[%c8] : memref<49xf32, #tpu.memory_space<smem>>
    %c9 = arith.constant 9 : index
    %9 = memref.load %arg1[%c9] : memref<49xf32, #tpu.memory_space<smem>>
    %c10 = arith.constant 10 : index
    %10 = memref.load %arg1[%c10] : memref<49xf32, #tpu.memory_space<smem>>
    %c11 = arith.constant 11 : index
    %11 = memref.load %arg1[%c11] : memref<49xf32, #tpu.memory_space<smem>>
    %c12 = arith.constant 12 : index
    %12 = memref.load %arg1[%c12] : memref<49xf32, #tpu.memory_space<smem>>
    %c13 = arith.constant 13 : index
    %13 = memref.load %arg1[%c13] : memref<49xf32, #tpu.memory_space<smem>>
    %c14 = arith.constant 14 : index
    %14 = memref.load %arg1[%c14] : memref<49xf32, #tpu.memory_space<smem>>
    %c15 = arith.constant 15 : index
    %15 = memref.load %arg1[%c15] : memref<49xf32, #tpu.memory_space<smem>>
    %c16 = arith.constant 16 : index
    %16 = memref.load %arg1[%c16] : memref<49xf32, #tpu.memory_space<smem>>
    %c17 = arith.constant 17 : index
    %17 = memref.load %arg1[%c17] : memref<49xf32, #tpu.memory_space<smem>>
    %c18 = arith.constant 18 : index
    %18 = memref.load %arg1[%c18] : memref<49xf32, #tpu.memory_space<smem>>
    %c19 = arith.constant 19 : index
    %19 = memref.load %arg1[%c19] : memref<49xf32, #tpu.memory_space<smem>>
    %c20 = arith.constant 20 : index
    %20 = memref.load %arg1[%c20] : memref<49xf32, #tpu.memory_space<smem>>
    %c21 = arith.constant 21 : index
    %21 = memref.load %arg1[%c21] : memref<49xf32, #tpu.memory_space<smem>>
    %c22 = arith.constant 22 : index
    %22 = memref.load %arg1[%c22] : memref<49xf32, #tpu.memory_space<smem>>
    %c23 = arith.constant 23 : index
    %23 = memref.load %arg1[%c23] : memref<49xf32, #tpu.memory_space<smem>>
    %c24 = arith.constant 24 : index
    %24 = memref.load %arg1[%c24] : memref<49xf32, #tpu.memory_space<smem>>
    %c25 = arith.constant 25 : index
    %25 = memref.load %arg1[%c25] : memref<49xf32, #tpu.memory_space<smem>>
    %c26 = arith.constant 26 : index
    %26 = memref.load %arg1[%c26] : memref<49xf32, #tpu.memory_space<smem>>
    %c27 = arith.constant 27 : index
    %27 = memref.load %arg1[%c27] : memref<49xf32, #tpu.memory_space<smem>>
    %c28 = arith.constant 28 : index
    %28 = memref.load %arg1[%c28] : memref<49xf32, #tpu.memory_space<smem>>
    %c29 = arith.constant 29 : index
    %29 = memref.load %arg1[%c29] : memref<49xf32, #tpu.memory_space<smem>>
    %c30 = arith.constant 30 : index
    %30 = memref.load %arg1[%c30] : memref<49xf32, #tpu.memory_space<smem>>
    %c31 = arith.constant 31 : index
    %31 = memref.load %arg1[%c31] : memref<49xf32, #tpu.memory_space<smem>>
    %c32 = arith.constant 32 : index
    %32 = memref.load %arg1[%c32] : memref<49xf32, #tpu.memory_space<smem>>
    %c33 = arith.constant 33 : index
    %33 = memref.load %arg1[%c33] : memref<49xf32, #tpu.memory_space<smem>>
    %c34 = arith.constant 34 : index
    %34 = memref.load %arg1[%c34] : memref<49xf32, #tpu.memory_space<smem>>
    %c35 = arith.constant 35 : index
    %35 = memref.load %arg1[%c35] : memref<49xf32, #tpu.memory_space<smem>>
    %c36 = arith.constant 36 : index
    %36 = memref.load %arg1[%c36] : memref<49xf32, #tpu.memory_space<smem>>
    %c37 = arith.constant 37 : index
    %37 = memref.load %arg1[%c37] : memref<49xf32, #tpu.memory_space<smem>>
    %c38 = arith.constant 38 : index
    %38 = memref.load %arg1[%c38] : memref<49xf32, #tpu.memory_space<smem>>
    %c39 = arith.constant 39 : index
    %39 = memref.load %arg1[%c39] : memref<49xf32, #tpu.memory_space<smem>>
    %c40 = arith.constant 40 : index
    %40 = memref.load %arg1[%c40] : memref<49xf32, #tpu.memory_space<smem>>
    %c41 = arith.constant 41 : index
    %41 = memref.load %arg1[%c41] : memref<49xf32, #tpu.memory_space<smem>>
    %c42 = arith.constant 42 : index
    %42 = memref.load %arg1[%c42] : memref<49xf32, #tpu.memory_space<smem>>
    %c43 = arith.constant 43 : index
    %43 = memref.load %arg1[%c43] : memref<49xf32, #tpu.memory_space<smem>>
    %c44 = arith.constant 44 : index
    %44 = memref.load %arg1[%c44] : memref<49xf32, #tpu.memory_space<smem>>
    %c45 = arith.constant 45 : index
    %45 = memref.load %arg1[%c45] : memref<49xf32, #tpu.memory_space<smem>>
    %c46 = arith.constant 46 : index
    %46 = memref.load %arg1[%c46] : memref<49xf32, #tpu.memory_space<smem>>
    %c47 = arith.constant 47 : index
    %47 = memref.load %arg1[%c47] : memref<49xf32, #tpu.memory_space<smem>>
    %c48 = arith.constant 48 : index
    %48 = memref.load %arg1[%c48] : memref<49xf32, #tpu.memory_space<smem>>
    %c0_i32 = arith.constant 0 : i32
    %c128_i32 = arith.constant 128 : i32
    %49 = arith.muli %c0_i32, %c128_i32 : i32
    %50 = tpu.assume_multiple %49, 128 : i32
    %c0_0 = arith.constant 0 : index
    %c0_1 = arith.constant 0 : index
    %51 = arith.index_cast %50 : i32 to index
    %52 = vector.load %arg2[%c0_0, %c0_1, %51] : memref<8x8x128xf32, #tpu.memory_space<vmem>>, vector<1x8x128xf32>
    %53 = vector.shape_cast %52 : vector<1x8x128xf32> to vector<8x128xf32>
    %54 = vector.broadcast %0 : f32 to vector<8x128xf32>
    %55 = arith.mulf %53, %54 : vector<8x128xf32>
    %56 = vector.broadcast %1 : f32 to vector<8x128xf32>
    %57 = arith.mulf %53, %56 : vector<8x128xf32>
    %58 = vector.broadcast %2 : f32 to vector<8x128xf32>
    %59 = arith.mulf %53, %58 : vector<8x128xf32>
    %60 = vector.broadcast %3 : f32 to vector<8x128xf32>
    %61 = arith.mulf %53, %60 : vector<8x128xf32>
    %c1_2 = arith.constant 1 : index
    %c0_3 = arith.constant 0 : index
    %62 = arith.index_cast %50 : i32 to index
    %63 = vector.load %arg2[%c1_2, %c0_3, %62] : memref<8x8x128xf32, #tpu.memory_space<vmem>>, vector<1x8x128xf32>
    %64 = vector.shape_cast %63 : vector<1x8x128xf32> to vector<8x128xf32>
    %65 = vector.broadcast %4 : f32 to vector<8x128xf32>
    %66 = arith.mulf %64, %65 : vector<8x128xf32>
    %67 = arith.addf %55, %66 : vector<8x128xf32>
    %68 = vector.broadcast %5 : f32 to vector<8x128xf32>
    %69 = arith.mulf %64, %68 : vector<8x128xf32>
    %70 = arith.addf %57, %69 : vector<8x128xf32>
    %71 = vector.broadcast %6 : f32 to vector<8x128xf32>
    %72 = arith.mulf %64, %71 : vector<8x128xf32>
    %73 = arith.addf %59, %72 : vector<8x128xf32>
    %74 = vector.broadcast %7 : f32 to vector<8x128xf32>
    %75 = arith.mulf %64, %74 : vector<8x128xf32>
    %76 = arith.addf %61, %75 : vector<8x128xf32>
    %c2_4 = arith.constant 2 : index
    %c0_5 = arith.constant 0 : index
    %77 = arith.index_cast %50 : i32 to index
    %78 = vector.load %arg2[%c2_4, %c0_5, %77] : memref<8x8x128xf32, #tpu.memory_space<vmem>>, vector<1x8x128xf32>
    %79 = vector.shape_cast %78 : vector<1x8x128xf32> to vector<8x128xf32>
    %80 = vector.broadcast %8 : f32 to vector<8x128xf32>
    %81 = arith.mulf %79, %80 : vector<8x128xf32>
    %82 = arith.addf %67, %81 : vector<8x128xf32>
    %83 = vector.broadcast %9 : f32 to vector<8x128xf32>
    %84 = arith.mulf %79, %83 : vector<8x128xf32>
    %85 = arith.addf %70, %84 : vector<8x128xf32>
    %86 = vector.broadcast %10 : f32 to vector<8x128xf32>
    %87 = arith.mulf %79, %86 : vector<8x128xf32>
    %88 = arith.addf %73, %87 : vector<8x128xf32>
    %89 = vector.broadcast %11 : f32 to vector<8x128xf32>
    %90 = arith.mulf %79, %89 : vector<8x128xf32>
    %91 = arith.addf %76, %90 : vector<8x128xf32>
    %c3_6 = arith.constant 3 : index
    %c0_7 = arith.constant 0 : index
    %92 = arith.index_cast %50 : i32 to index
    %93 = vector.load %arg2[%c3_6, %c0_7, %92] : memref<8x8x128xf32, #tpu.memory_space<vmem>>, vector<1x8x128xf32>
    %94 = vector.shape_cast %93 : vector<1x8x128xf32> to vector<8x128xf32>
    %95 = vector.broadcast %12 : f32 to vector<8x128xf32>
    %96 = arith.mulf %94, %95 : vector<8x128xf32>
    %97 = arith.addf %82, %96 : vector<8x128xf32>
    %98 = vector.broadcast %13 : f32 to vector<8x128xf32>
    %99 = arith.mulf %94, %98 : vector<8x128xf32>
    %100 = arith.addf %85, %99 : vector<8x128xf32>
    %101 = vector.broadcast %14 : f32 to vector<8x128xf32>
    %102 = arith.mulf %94, %101 : vector<8x128xf32>
    %103 = arith.addf %88, %102 : vector<8x128xf32>
    %104 = vector.broadcast %15 : f32 to vector<8x128xf32>
    %105 = arith.mulf %94, %104 : vector<8x128xf32>
    %106 = arith.addf %91, %105 : vector<8x128xf32>
    %c4_8 = arith.constant 4 : index
    %c0_9 = arith.constant 0 : index
    %107 = arith.index_cast %50 : i32 to index
    %108 = vector.load %arg2[%c4_8, %c0_9, %107] : memref<8x8x128xf32, #tpu.memory_space<vmem>>, vector<1x8x128xf32>
    %109 = vector.shape_cast %108 : vector<1x8x128xf32> to vector<8x128xf32>
    %110 = vector.broadcast %16 : f32 to vector<8x128xf32>
    %111 = arith.mulf %109, %110 : vector<8x128xf32>
    %112 = arith.addf %97, %111 : vector<8x128xf32>
    %113 = vector.broadcast %17 : f32 to vector<8x128xf32>
    %114 = arith.mulf %109, %113 : vector<8x128xf32>
    %115 = arith.addf %100, %114 : vector<8x128xf32>
    %116 = vector.broadcast %18 : f32 to vector<8x128xf32>
    %117 = arith.mulf %109, %116 : vector<8x128xf32>
    %118 = arith.addf %103, %117 : vector<8x128xf32>
    %119 = vector.broadcast %19 : f32 to vector<8x128xf32>
    %120 = arith.mulf %109, %119 : vector<8x128xf32>
    %121 = arith.addf %106, %120 : vector<8x128xf32>
    %c5_10 = arith.constant 5 : index
    %c0_11 = arith.constant 0 : index
    %122 = arith.index_cast %50 : i32 to index
    %123 = vector.load %arg2[%c5_10, %c0_11, %122] : memref<8x8x128xf32, #tpu.memory_space<vmem>>, vector<1x8x128xf32>
    %124 = vector.shape_cast %123 : vector<1x8x128xf32> to vector<8x128xf32>
    %125 = vector.broadcast %20 : f32 to vector<8x128xf32>
    %126 = arith.mulf %124, %125 : vector<8x128xf32>
    %127 = arith.addf %112, %126 : vector<8x128xf32>
    %128 = vector.broadcast %21 : f32 to vector<8x128xf32>
    %129 = arith.mulf %124, %128 : vector<8x128xf32>
    %130 = arith.addf %115, %129 : vector<8x128xf32>
    %131 = vector.broadcast %22 : f32 to vector<8x128xf32>
    %132 = arith.mulf %124, %131 : vector<8x128xf32>
    %133 = arith.addf %118, %132 : vector<8x128xf32>
    %134 = vector.broadcast %23 : f32 to vector<8x128xf32>
    %135 = arith.mulf %124, %134 : vector<8x128xf32>
    %136 = arith.addf %121, %135 : vector<8x128xf32>
    %c6_12 = arith.constant 6 : index
    %c0_13 = arith.constant 0 : index
    %137 = arith.index_cast %50 : i32 to index
    %138 = vector.load %arg2[%c6_12, %c0_13, %137] : memref<8x8x128xf32, #tpu.memory_space<vmem>>, vector<1x8x128xf32>
    %139 = vector.shape_cast %138 : vector<1x8x128xf32> to vector<8x128xf32>
    %140 = vector.broadcast %24 : f32 to vector<8x128xf32>
    %141 = arith.mulf %139, %140 : vector<8x128xf32>
    %142 = arith.addf %127, %141 : vector<8x128xf32>
    %143 = vector.broadcast %25 : f32 to vector<8x128xf32>
    %144 = arith.mulf %139, %143 : vector<8x128xf32>
    %145 = arith.addf %130, %144 : vector<8x128xf32>
    %146 = vector.broadcast %26 : f32 to vector<8x128xf32>
    %147 = arith.mulf %139, %146 : vector<8x128xf32>
    %148 = arith.addf %133, %147 : vector<8x128xf32>
    %149 = vector.broadcast %27 : f32 to vector<8x128xf32>
    %150 = arith.mulf %139, %149 : vector<8x128xf32>
    %151 = arith.addf %136, %150 : vector<8x128xf32>
    %c7_14 = arith.constant 7 : index
    %c0_15 = arith.constant 0 : index
    %152 = arith.index_cast %50 : i32 to index
    %153 = vector.load %arg2[%c7_14, %c0_15, %152] : memref<8x8x128xf32, #tpu.memory_space<vmem>>, vector<1x8x128xf32>
    %154 = vector.shape_cast %153 : vector<1x8x128xf32> to vector<8x128xf32>
    %155 = vector.broadcast %28 : f32 to vector<8x128xf32>
    %156 = arith.mulf %154, %155 : vector<8x128xf32>
    %157 = arith.addf %142, %156 : vector<8x128xf32>
    %158 = vector.broadcast %29 : f32 to vector<8x128xf32>
    %159 = arith.mulf %154, %158 : vector<8x128xf32>
    %160 = arith.addf %145, %159 : vector<8x128xf32>
    %161 = vector.broadcast %30 : f32 to vector<8x128xf32>
    %162 = arith.mulf %154, %161 : vector<8x128xf32>
    %163 = arith.addf %148, %162 : vector<8x128xf32>
    %164 = vector.broadcast %31 : f32 to vector<8x128xf32>
    %165 = arith.mulf %154, %164 : vector<8x128xf32>
    %166 = arith.addf %151, %165 : vector<8x128xf32>
    %167 = vector.broadcast %32 : f32 to vector<8x128xf32>
    %168 = arith.addf %157, %167 : vector<8x128xf32>
    %cst = arith.constant 0.000000e+00 : f32
    %169 = vector.broadcast %cst : f32 to vector<8x128xf32>
    %170 = arith.cmpf oge, %168, %169 : vector<8x128xf32>
    %cst_16 = arith.constant 0.00999999977 : f32
    %171 = vector.broadcast %cst_16 : f32 to vector<8x128xf32>
    %172 = arith.mulf %171, %168 : vector<8x128xf32>
    %173 = arith.select %170, %168, %172 : vector<8x128xi1>, vector<8x128xf32>
    %174 = vector.broadcast %33 : f32 to vector<8x128xf32>
    %175 = arith.addf %160, %174 : vector<8x128xf32>
    %cst_17 = arith.constant 0.000000e+00 : f32
    %176 = vector.broadcast %cst_17 : f32 to vector<8x128xf32>
    %177 = arith.cmpf oge, %175, %176 : vector<8x128xf32>
    %cst_18 = arith.constant 0.00999999977 : f32
    %178 = vector.broadcast %cst_18 : f32 to vector<8x128xf32>
    %179 = arith.mulf %178, %175 : vector<8x128xf32>
    %180 = arith.select %177, %175, %179 : vector<8x128xi1>, vector<8x128xf32>
    %181 = vector.broadcast %34 : f32 to vector<8x128xf32>
    %182 = arith.addf %163, %181 : vector<8x128xf32>
    %cst_19 = arith.constant 0.000000e+00 : f32
    %183 = vector.broadcast %cst_19 : f32 to vector<8x128xf32>
    %184 = arith.cmpf oge, %182, %183 : vector<8x128xf32>
    %cst_20 = arith.constant 0.00999999977 : f32
    %185 = vector.broadcast %cst_20 : f32 to vector<8x128xf32>
    %186 = arith.mulf %185, %182 : vector<8x128xf32>
    %187 = arith.select %184, %182, %186 : vector<8x128xi1>, vector<8x128xf32>
    %188 = vector.broadcast %35 : f32 to vector<8x128xf32>
    %189 = arith.addf %166, %188 : vector<8x128xf32>
    %cst_21 = arith.constant 0.000000e+00 : f32
    %190 = vector.broadcast %cst_21 : f32 to vector<8x128xf32>
    %191 = arith.cmpf oge, %189, %190 : vector<8x128xf32>
    %cst_22 = arith.constant 0.00999999977 : f32
    %192 = vector.broadcast %cst_22 : f32 to vector<8x128xf32>
    %193 = arith.mulf %192, %189 : vector<8x128xf32>
    %194 = arith.select %191, %189, %193 : vector<8x128xi1>, vector<8x128xf32>
    %195 = vector.broadcast %36 : f32 to vector<8x128xf32>
    %196 = arith.mulf %173, %195 : vector<8x128xf32>
    %197 = vector.broadcast %37 : f32 to vector<8x128xf32>
    %198 = arith.mulf %173, %197 : vector<8x128xf32>
    %199 = vector.broadcast %38 : f32 to vector<8x128xf32>
    %200 = arith.mulf %180, %199 : vector<8x128xf32>
    %201 = arith.addf %196, %200 : vector<8x128xf32>
    %202 = vector.broadcast %39 : f32 to vector<8x128xf32>
    %203 = arith.mulf %180, %202 : vector<8x128xf32>
    %204 = arith.addf %198, %203 : vector<8x128xf32>
    %205 = vector.broadcast %40 : f32 to vector<8x128xf32>
    %206 = arith.mulf %187, %205 : vector<8x128xf32>
    %207 = arith.addf %201, %206 : vector<8x128xf32>
    %208 = vector.broadcast %41 : f32 to vector<8x128xf32>
    %209 = arith.mulf %187, %208 : vector<8x128xf32>
    %210 = arith.addf %204, %209 : vector<8x128xf32>
    %211 = vector.broadcast %42 : f32 to vector<8x128xf32>
    %212 = arith.mulf %194, %211 : vector<8x128xf32>
    %213 = arith.addf %207, %212 : vector<8x128xf32>
    %214 = vector.broadcast %43 : f32 to vector<8x128xf32>
    %215 = arith.mulf %194, %214 : vector<8x128xf32>
    %216 = arith.addf %210, %215 : vector<8x128xf32>
    %217 = vector.broadcast %44 : f32 to vector<8x128xf32>
    %218 = arith.addf %213, %217 : vector<8x128xf32>
    %cst_23 = arith.constant 0.000000e+00 : f32
    %219 = vector.broadcast %cst_23 : f32 to vector<8x128xf32>
    %220 = arith.cmpf oge, %218, %219 : vector<8x128xf32>
    %cst_24 = arith.constant 0.00999999977 : f32
    %221 = vector.broadcast %cst_24 : f32 to vector<8x128xf32>
    %222 = arith.mulf %221, %218 : vector<8x128xf32>
    %223 = arith.select %220, %218, %222 : vector<8x128xi1>, vector<8x128xf32>
    %224 = vector.broadcast %45 : f32 to vector<8x128xf32>
    %225 = arith.addf %216, %224 : vector<8x128xf32>
    %cst_25 = arith.constant 0.000000e+00 : f32
    %226 = vector.broadcast %cst_25 : f32 to vector<8x128xf32>
    %227 = arith.cmpf oge, %225, %226 : vector<8x128xf32>
    %cst_26 = arith.constant 0.00999999977 : f32
    %228 = vector.broadcast %cst_26 : f32 to vector<8x128xf32>
    %229 = arith.mulf %228, %225 : vector<8x128xf32>
    %230 = arith.select %227, %225, %229 : vector<8x128xi1>, vector<8x128xf32>
    %231 = vector.broadcast %46 : f32 to vector<8x128xf32>
    %232 = arith.mulf %223, %231 : vector<8x128xf32>
    %233 = vector.broadcast %47 : f32 to vector<8x128xf32>
    %234 = arith.mulf %230, %233 : vector<8x128xf32>
    %235 = arith.addf %232, %234 : vector<8x128xf32>
    %236 = vector.broadcast %48 : f32 to vector<8x128xf32>
    %237 = arith.addf %235, %236 : vector<8x128xf32>
    %cst_27 = arith.constant 0.000000e+00 : f32
    %238 = vector.broadcast %cst_27 : f32 to vector<8x128xf32>
    %239 = arith.subf %238, %237 : vector<8x128xf32>
    %240 = math.exp %239 : vector<8x128xf32>
    %cst_28 = arith.constant 1.000000e+00 : f32
    %241 = vector.broadcast %cst_28 : f32 to vector<8x128xf32>
    %242 = arith.addf %241, %240 : vector<8x128xf32>
    %243 = tpu.reciprocal %242 {approx = true} : vector<8x128xf32> -> vector<8x128xf32>
    %c0_29 = arith.constant 0 : index
    %244 = arith.index_cast %50 : i32 to index
    %245 = vector.load %arg3[%c0_29, %244] : memref<8x128xf32, #tpu.memory_space<vmem>>, vector<8x128xf32>
    tpu.vector_store %arg3[%c0_29, %244], %243 {strides = array<i32>} : memref<8x128xf32, #tpu.memory_space<vmem>>, vector<8x128xf32>,
    %c1_i32 = arith.constant 1 : i32
    return
  }
  func.func @transform_0(%arg0: i32, %arg1: memref<49xf32, #tpu.memory_space<smem>>) -> (i32, i32, i32) {
    %c0_i32 = arith.constant 0 : i32
    %c0_i32_0 = arith.constant 0 : i32
    %c0_i32_1 = arith.constant 0 : i32
    return %c0_i32, %c0_i32_0, %arg0 : i32, i32, i32
  }
  func.func @transform_1(%arg0: i32, %arg1: memref<49xf32, #tpu.memory_space<smem>>) -> (i32, i32) {
    %c0_i32 = arith.constant 0 : i32
    %c0_i32_0 = arith.constant 0 : i32
    return %c0_i32, %arg0 : i32, i32
  }
}

</mosaic_0001>

<bundles_post_ra>
// kernel: tpu_custom_call.1
= control target key start
LH: loop header
LB: loop body
LE: loop exit
PB: predicated region body
PF: predicated region fallthrough
CT: control target
= control target key end

     0   :  { %s571_s0 = inlined_call_operand.hbm [shape: f32[49], index: 0, kind: input, shape index: {}]   ;;  %s572_s1 = inlined_call_operand.hbm [shape: f32[8,8,128], index: 1, kind: input, shape index: {}]   ;;  %s573_s2 = inlined_call_operand.hbm [shape: f32[8,128], index: 2, kind: output, shape index: {}]  }
   0x1   :  { %s335_s11 = scalar_lea.hbm %s571_s0, 16 }
   0x2   :  { %p336_p0 = scmp.ne.s32.totalorder %s571_s0, %s335_s11  ;;  %p339_p1 = scmp.lt.u32.totalorder %s335_s11, %s571_s0 }
   0x4   :  { %p341_p2 = pnand %p339_p1, %p336_p0 }
   0x6   :  { %344 = shalt.err (!%p341_p2)  }
   0x7   :  { %s395_s16 = smov [#allocation3]  }
   0x8   :  { %8 = dma.hbm_to_smem %s571_s0, 16, %s395_s16, [#allocation2] }
   0x9   :  { %389 = dma.done.wait [#allocation2], 16 }
   0xa   :  { %390 = vsyncadd [#allocation2], 4294967280 }
   0xb   :  { %10 = sfence }
   0xc   :  { %11 = vsyncpa [#allocation5], 0 }
   0xd   :  { %12 = vsyncpa [#allocation6], 0  ;;  %s396_s19 = smov [#allocation4]   ;;  %s345_s23 = scalar_lea.hbm %s572_s1, 1024 }
   0xe   :  { %s18_s20 = sshll.u32 %s396_s19, 4  ;;  %p346_p3 = scmp.ne.s32.totalorder %s572_s1, %s345_s23  ;;  %s19_s20 = int_to_ptr.vmem [resolvable:$true] %s18_s20 }
   0xf   :  { %p349_p4 = scmp.lt.u32.totalorder %s345_s23, %s572_s1 }
  0x11   :  { %p351_p5 = pnand %p349_p4, %p346_p3 }
  0x13   :  { %354 = shalt.err (!%p351_p5)
}
  0x14   :  { %s355_s0 = scalar_lea.vmem %s19_s20, 1024  ;;  %p360_p7 = scmp.lt.s32.totalorder %s19_s20, %s19_s20 }
  0x15   :  { %p356_p6 = scmp.ne.s32.totalorder %s19_s20, %s355_s0  ;;  %p361_p8 = scmp.lt.s32.totalorder %s355_s0, %s355_s0 }
  0x17   :  { %p362_p9 = por %p361_p8, %p360_p7 }
  0x19   :  { %p363_p10 = pnand %p362_p9, %p356_p6 }
  0x1b   :  { %366 = shalt.err (!%p363_p10)
}
  0x1c   :  { %s397_s28 = smov 128   ;;  %s398_s29 = smov 8  }
  0x1d   :  { %24 = dma.hbm_to_vmem [thread:$0]  %s572_s1, 1024, %s19_s20, [#allocation5], %s397_s28, %s397_s28, %s398_s29  }
  0x1e   :  { %391 = dma.done.wait [#allocation5], 1024  }
  0x1f   :  { %392 = vsyncadd [#allocation5], 4294966272  ;;  %s28_s4 = sld [smem:[#allocation3]]  ;;  %s278_s5 = sld [smem:[#allocation3 + $0x1]]  ;;  %v77_v0 = vld [vmem:[#allocation4] sm:$0xff]  ;;  %v88_v3 = vld [vmem:[#allocation4 + $0x8] sm:$0xff] }
  0x20   :  { %s279_s6 = sld [smem:[#allocation3 + $0x2]]  ;;  %s280_s7 = sld [smem:[#allocation3 + $0x3]]  ;;  %v103_v12 = vld [vmem:[#allocation4 + $0x10] sm:$0xff]  ;;  %v118_v29 = vld [vmem:[#allocation4 + $0x18] sm:$0xff]  ;;  %v133_v38 = vld [vmem:[#allocation4 + $0x20] sm:$0xff] }
  0x21   :  { %s281_s8 = sld [smem:[#allocation3 + $0x4]]  ;;  %s282_s9 = sld [smem:[#allocation3 + $0x5]]  ;;  %v148_v55 = vld [vmem:[#allocation4 + $0x28] sm:$0xff] }
  0x22   :  { %s439_s10 = sld [smem:[#allocation3 + $0x6]]  ;;  %s441_s11 = sld [smem:[#allocation3 + $0x7]] }
  0x23   :  { %s443_s12 = sld [smem:[#allocation3 + $0x8]]  ;;  %s445_s13 = sld [smem:[#allocation3 + $0x9]] }
  0x24   :  { %s447_s14 = sld [smem:[#allocation3 + $0xa]]  ;;  %s449_s15 = sld [smem:[#allocation3 + $0xb]] }
  0x25   :  { %s451_s1 = sld [smem:[#allocation3 + $0xc]]  ;;  %s453_s16 = sld [smem:[#allocation3 + $0xd]]  ;;  %v78_v1 = vstv %s28_s4  ;;  %v80_v2 = vstv %s278_s5 }
  0x26   :  { %s455_s17 = sld [smem:[#allocation3 + $0xe]]  ;;  %s457_s18 = sld [smem:[#allocation3 + $0xf]]  ;;  %v79_v4 = vmul.f32 %v78_v1, %v77_v0  ;;  %v81_v5 = vmul.f32 %v80_v2, %v77_v0  ;;  %v82_v6 = vstv %s279_s6  ;;  %v84_v7 = vstv %s280_s7 }
  0x27   :  { %s459_s19 = sld [smem:[#allocation3 + $0x10]]  ;;  %s461_s20 = sld [smem:[#allocation3 + $0x11]]  ;;  %v83_v8 = vmul.f32 %v82_v6, %v77_v0  ;;  %v85_v9 = vmul.f32 %v84_v7, %v77_v0  ;;  %v89_v10 = vstv %s281_s8  ;;  %v92_v11 = vstv %s282_s9  ;;  %v163_v0 = vld [vmem:[#allocation4 + $0x30] sm:$0xff] }
  0x28   :  { %v90_v13 = vmul.f32 %v89_v10, %v88_v3  ;;  %v93_v14 = vmul.f32 %v92_v11, %v88_v3  ;;  %v95_v15 = vstv %s439_s10  ;;  %v98_v16 = vstv %s441_s11  ;;  %s465_s21 = sld [smem:[#allocation3 + $0x12]]  ;;  %s467_s22 = sld [smem:[#allocation3 + $0x13]] }
  0x29   :  { %v96_v17 = vmul.f32 %v95_v15, %v88_v3  ;;  %v99_v18 = vmul.f32 %v98_v16, %v88_v3  ;;  %v104_v19 = vstv %s443_s12  ;;  %v107_v20 = vstv %s445_s13  ;;  %s471_s23 = sld [smem:[#allocation3 + $0x14]]  ;;  %s473_s24 = sld [smem:[#allocation3 + $0x15]] }
  0x2a   :  { %v91_v21 = vadd.f32 %v90_v13, %v79_v4  ;;  %v94_v22 = vadd.f32 %v93_v14, %v81_v5  ;;  %v105_v23 = vmul.f32 %v104_v19, %v103_v12  ;;  %v108_v24 = vmul.f32 %v107_v20, %v103_v12  ;;  %s475_s25 = sld [smem:[#allocation3 + $0x16]]  ;;  %s477_s26 = sld [smem:[#allocation3 + $0x17]] }
  0x2b   :  { %v97_v25 = vadd.f32 %v96_v17, %v83_v8  ;;  %v100_v26 = vadd.f32 %v99_v18, %v85_v9  ;;  %v110_v27 = vstv %s447_s14  ;;  %v113_v28 = vstv %s449_s15  ;;  %s481_s27 = sld [smem:[#allocation3 + $0x18]]  ;;  %s483_s0 = sld [smem:[#allocation3 + $0x19]]  ;;  %v178_v17 = vld [vmem:[#allocation4 + $0x38] sm:$0xff] }
  0x2c   :  { %v106_v30 = vadd.f32 %v105_v23, %v91_v21  ;;  %v109_v31 = vadd.f32 %v108_v24, %v94_v22  ;;  %v111_v32 = vmul.f32 %v110_v27, %v103_v12  ;;  %v114_v33 = vmul.f32 %v113_v28, %v103_v12  ;;  %s489_s28 = sld [smem:[#allocation3 + $0x1a]]  ;;  %s491_s29 = sld [smem:[#allocation3 + $0x1b]] }
  0x2d   :  { %v119_v34 = vstv %s451_s1  ;;  %v122_v35 = vstv %s453_s16  ;;  %v125_v36 = vstv %s455_s17  ;;  %v128_v37 = vstv %s457_s18  ;;  %s495_s30 = sld [smem:[#allocation3 + $0x1c]]  ;;  %s497_s3 = sld [smem:[#allocation3 + $0x1d]] }
  0x2e   :  { %v112_v39 = vadd.f32 %v111_v32, %v97_v25  ;;  %v115_v40 = vadd.f32 %v114_v33, %v100_v26  ;;  %v120_v41 = vmul.f32 %v119_v34, %v118_v29  ;;  %v123_v42 = vmul.f32 %v122_v35, %v118_v29  ;;  %s499_s4 = sld [smem:[#allocation3 + $0x1e]]  ;;  %s501_s5 = sld [smem:[#allocation3 + $0x1f]] }
  0x2f   :  { %v126_v43 = vmul.f32 %v125_v36, %v118_v29  ;;  %v129_v44 = vmul.f32 %v128_v37, %v118_v29  ;;  %v134_v45 = vstv %s459_s19  ;;  %v137_v46 = vstv %s461_s20  ;;  %s505_s6 = sld [smem:[#allocation3 + $0x20]]  ;;  %s507_s7 = sld [smem:[#allocation3 + $0x21]] }
  0x30   :  { %v121_v47 = vadd.f32 %v120_v41, %v106_v30  ;;  %v124_v48 = vadd.f32 %v123_v42, %v109_v31  ;;  %v135_v49 = vmul.f32 %v134_v45, %v133_v38  ;;  %v138_v50 = vmul.f32 %v137_v46, %v133_v38  ;;  %s513_s8 = sld [smem:[#allocation3 + $0x22]]  ;;  %s515_s9 = sld [smem:[#allocation3 + $0x23]] }
  0x31   :  { %v127_v51 = vadd.f32 %v126_v43, %v112_v39  ;;  %v130_v52 = vadd.f32 %v129_v44, %v115_v40  ;;  %v140_v53 = vstv %s465_s21  ;;  %v143_v54 = vstv %s467_s22  ;;  %s517_s10 = sld [smem:[#allocation3 + $0x24]]  ;;  %s519_s11 = sld [smem:[#allocation3 + $0x25]] }
  0x32   :  { %v136_v56 = vadd.f32 %v135_v49, %v121_v47  ;;  %v139_v57 = vadd.f32 %v138_v50, %v124_v48  ;;  %v141_v58 = vmul.f32 %v140_v53, %v133_v38  ;;  %v144_v59 = vmul.f32 %v143_v54, %v133_v38  ;;  %s523_s12 = sld [smem:[#allocation3 + $0x26]]  ;;  %s525_s13 = sld [smem:[#allocation3 + $0x27]] }
  0x33   :  { %v149_v60 = vstv %s471_s23  ;;  %v152_v61 = vstv %s473_s24  ;;  %v155_v62 = vstv %s475_s25  ;;  %v158_v63 = vstv %s477_s26  ;;  %s527_s14 = sld [smem:[#allocation3 + $0x28]]  ;;  %s529_s15 = sld [smem:[#allocation3 + $0x29]] }
  0x34   :  { %v142_v1 = vadd.f32 %v141_v58, %v127_v51  ;;  %v145_v2 = vadd.f32 %v144_v59, %v130_v52  ;;  %v150_v3 = vmul.f32 %v149_v60, %v148_v55  ;;  %v153_v4 = vmul.f32 %v152_v61, %v148_v55  ;;  %s537_s1 = sld [smem:[#allocation3 + $0x2a]]  ;;  %s539_s16 = sld [smem:[#allocation3 + $0x2b]] }
  0x35   :  { %v156_v5 = vmul.f32 %v155_v62, %v148_v55  ;;  %v159_v6 = vmul.f32 %v158_v63, %v148_v55  ;;  %v164_v7 = vstv %s481_s27  ;;  %v167_v8 = vstv %s483_s0  ;;  %s549_s17 = sld [smem:[#allocation3 + $0x2c]]  ;;  %s551_s18 = sld [smem:[#allocation3 + $0x2d]] }
  0x36   :  { %v151_v9 = vadd.f32 %v150_v3, %v136_v56  ;;  %v154_v10 = vadd.f32 %v153_v4, %v139_v57  ;;  %v165_v11 = vmul.f32 %v164_v7, %v163_v0  ;;  %v168_v12 = vmul.f32 %v167_v8, %v163_v0  ;;  %s323_s19 = sld [smem:[#allocation3 + $0x2e]]  ;;  %s324_s20 = sld [smem:[#allocation3 + $0x2f]] }
  0x37   :  { %v157_v13 = vadd.f32 %v156_v5, %v142_v1  ;;  %v160_v14 = vadd.f32 %v159_v6, %v145_v2  ;;  %v170_v15 = vstv %s489_s28  ;;  %v173_v16 = vstv %s491_s29  ;;  %s325_s21 = sld [smem:[#allocation3 + $0x30]]  ;;  %s399_s22 = smov [#allocation7]  }
  0x38   :  { %v166_v18 = vadd.f32 %v165_v11, %v151_v9  ;;  %v169_v19 = vadd.f32 %v168_v12, %v154_v10  ;;  %v171_v20 = vmul.f32 %v170_v15, %v163_v0  ;;  %v174_v21 = vmul.f32 %v173_v16, %v163_v0  ;;  %s262_s23 = sshll.u32 %s399_s22, 4  ;;  %s263_s23 = int_to_ptr.vmem [resolvable:$true] %s262_s23 }
  0x39   :  { %v179_v22 = vstv %s495_s30  ;;  %v182_v23 = vstv %s497_s3  ;;  %v185_v24 = vstv %s499_s4  ;;  %v188_v25 = vstv %s501_s5  ;;  %s367_s24 = scalar_lea.vmem %s263_s23, 128  ;;  %p372_p12 = scmp.lt.s32.totalorder %s263_s23, %s263_s23 }
  0x3a   :  { %v172_v26 = vadd.f32 %v171_v20, %v157_v13  ;;  %v175_v27 = vadd.f32 %v174_v21, %v160_v14  ;;  %v180_v28 = vmul.f32 %v179_v22, %v178_v17  ;;  %v183_v29 = vmul.f32 %v182_v23, %v178_v17  ;;  %p368_p11 = scmp.ne.s32.totalorder %s263_s23, %s367_s24  ;;  %p373_p13 = scmp.lt.s32.totalorder %s367_s24, %s367_s24 }
  0x3b   :  { %v186_v30 = vmul.f32 %v185_v24, %v178_v17  ;;  %v189_v31 = vmul.f32 %v188_v25, %v178_v17  ;;  %v191_v32 = vstv %s505_s6  ;;  %v196_v33 = vstv %s507_s7 }
  0x3c   :  { %v181_v34 = vadd.f32 %v180_v28, %v166_v18  ;;  %v184_v35 = vadd.f32 %v183_v29, %v169_v19  ;;  %v201_v36 = vstv %s513_s8  ;;  %v206_v37 = vstv %s515_s9  ;;  %p374_p0 = por %p373_p13, %p372_p12 }
  0x3d   :  { %v187_v38 = vadd.f32 %v186_v30, %v172_v26  ;;  %v190_v39 = vadd.f32 %v189_v31, %v175_v27  ;;  %v211_v40 = vstv %s517_s10  ;;  %v213_v41 = vstv %s519_s11 }
  0x3e   :  { %v192_v42 = vadd.f32 %v191_v32, %v181_v34  ;;  %v197_v43 = vadd.f32 %v196_v33, %v184_v35  ;;  %v215_v44 = vstv %s523_s12  ;;  %v218_v45 = vstv %s525_s13  ;;  %p375_p1 = pnand %p374_p0, %p368_p11 }
  0x3f   :  { %v202_v46 = vadd.f32 %v201_v36, %v187_v38  ;;  %v207_v47 = vadd.f32 %v206_v37, %v190_v39  ;;  %v221_v48 = vstv %s527_s14  ;;  %v224_v49 = vstv %s529_s15 }
  0x40   :  { %vm193_vm0 = vcmp.ge.f32.partialorder %v192_v42, 0.0  ;;  %v194_v50 = vmul.f32 0.01, %v192_v42  ;;  %vm198_vm1 = vcmp.ge.f32.partialorder %v197_v43, 0.0  ;;  %v199_v51 = vmul.f32 0.01, %v197_v43 }
  0x41   :  { %vm203_vm2 = vcmp.ge.f32.partialorder %v202_v46, 0.0  ;;  %v204_v52 = vmul.f32 0.01, %v202_v46  ;;  %vm208_vm3 = vcmp.ge.f32.partialorder %v207_v47, 0.0  ;;  %v209_v53 = vmul.f32 0.01, %v207_v47 }
  0x42   :  { %v195_v54 = vsel %vm193_vm0, %v192_v42, %v194_v50  ;;  %v200_v55 = vsel %vm198_vm1, %v197_v43, %v199_v51  ;;  %v227_v56 = vstv %s537_s1  ;;  %v230_v57 = vstv %s539_s16 }
  0x43   :  { %v205_v58 = vsel %vm203_vm2, %v202_v46, %v204_v52  ;;  %v210_v59 = vsel %vm208_vm3, %v207_v47, %v209_v53  ;;  %v212_v60 = vmul.f32 %v211_v40, %v195_v54  ;;  %v214_v61 = vmul.f32 %v213_v41, %v195_v54 }
  0x44   :  { %v216_v62 = vmul.f32 %v215_v44, %v200_v55  ;;  %v219_v63 = vmul.f32 %v218_v45, %v200_v55  ;;  %v222_v0 = vmul.f32 %v221_v48, %v205_v58  ;;  %v225_v1 = vmul.f32 %v224_v49, %v205_v58 }
  0x45   :  { %v228_v4 = vmul.f32 %v227_v56, %v210_v59  ;;  %v231_v5 = vmul.f32 %v230_v57, %v210_v59  ;;  %v233_v8 = vstv %s549_s17  ;;  %v238_v9 = vstv %s551_s18 }
  0x46   :  { %v217_v2 = vadd.f32 %v216_v62, %v212_v60  ;;  %v220_v3 = vadd.f32 %v219_v63, %v214_v61  ;;  %v243_v14 = vstv %s323_s19  ;;  %v245_v15 = vstv %s324_s20 }
  0x47   :  { %v248_v22 = vstv %s325_s21 }
  0x48   :  { %v223_v6 = vadd.f32 %v222_v0, %v217_v2  ;;  %v226_v7 = vadd.f32 %v225_v1, %v220_v3 }
  0x4a   :  { %v229_v10 = vadd.f32 %v228_v4, %v223_v6  ;;  %v232_v11 = vadd.f32 %v231_v5, %v226_v7 }
  0x4c   :  { %v234_v12 = vadd.f32 %v233_v8, %v229_v10  ;;  %v239_v13 = vadd.f32 %v238_v9, %v232_v11 }
  0x4e   :  { %vm235_vm4 = vcmp.ge.f32.partialorder %v234_v12, 0.0  ;;  %v236_v16 = vmul.f32 0.01, %v234_v12  ;;  %vm240_vm5 = vcmp.ge.f32.partialorder %v239_v13, 0.0  ;;  %v241_v17 = vmul.f32 0.01, %v239_v13 }
  0x50   :  { %v237_v18 = vsel %vm235_vm4, %v234_v12, %v236_v16  ;;  %v242_v19 = vsel %vm240_vm5, %v239_v13, %v241_v17 }
  0x51   :  { %v244_v20 = vmul.f32 %v243_v14, %v237_v18  ;;  %v246_v21 = vmul.f32 %v245_v15, %v242_v19 }
  0x53   :  { %v247_v23 = vadd.f32 %v246_v21, %v244_v20 }
  0x55   :  { %v249_v24 = vadd.f32 %v248_v22, %v247_v23 }
  0x57   :  { %v250_v25 = vsub.f32 0.0, %v249_v24 }
  0x59   :  { %v251_v26 = vmul.f32 1.442695, %v250_v25 }
  0x5b   :  { %331 = vpow2.f32 %v251_v26 }
  0x65   :  { %v332_v27 = vpop.eup %331 }
  0x66   :  { %v253_v28 = vadd.f32 1.0, %v332_v27 }
  0x68   :  { %333 = vrcp.f32 %v253_v28 }
  0x72   :  { %v334_v29 = vpop.eup %333 }
  0x73   :  { %255 = vst [vmem:[#allocation7] sm:$0xff] %v334_v29 }
  0x74   :  { %378 = shalt.err (!%p375_p1)
}
  0x75   :  { %s379_s27 = scalar_lea.hbm %s573_s2, 128 }
  0x76   :  { %p380_p2 = scmp.ne.s32.totalorder %s573_s2, %s379_s27  ;;  %p383_p3 = scmp.lt.u32.totalorder %s379_s27, %s573_s2 }
  0x78   :  { %p385_p4 = pnand %p383_p3, %p380_p2 }
  0x7a   :  { %388 = shalt.err (!%p385_p4)
}
  0x7b   :  { %265 = dma.vmem_to_hbm [thread:$0]  %s263_s23, 128, %s573_s2, [#allocation6]  }
  0x7c   :  { %393 = dma.done.wait [#allocation6], 128  }
  0x7d   :  { %394 = vsyncadd [#allocation6], 4294967168 }
  0x7e   :  { %269 = vsyncpa [#allocation5], 1 }
  0x7f   :  { %270 = vsyncpa [#allocation6], 1 }

</bundles_post_ra>
